<compile_context>
chip_gen: v5e
topology: v5e:2x2
jax: 0.10.0
libtpu: 0.0.40
codegen_flags: <defaults>
</compile_context>

<pallas_src>
import jax
import jax.numpy as jnp
from jax import lax
from jax.experimental import pallas as pl
from jax.experimental.pallas import tpu as pltpu


def _attn_kernel(q_ref, k_ref, v_ref, rel_ref, e_ref, wp_ref, bp_ref,
                 o_ref, acc_ref):
    h = pl.program_id(2)
    last_h = pl.num_programs(2) - 1

    @pl.when(h == 0)
    def _():
        acc_ref[...] = jnp.zeros_like(acc_ref)

    q = q_ref[0, 0].astype(jnp.float32)          # (TQ, Dh)
    k = k_ref[0, 0].astype(jnp.float32)          # (N,  Dh)  (qk scale folded in)
    v = v_ref[0, 0].astype(jnp.float32)          # (N,  Dh)

    # scores: (TQ, N) = q @ k^T
    s = lax.dot_general(q, k, (((1,), (1,)), ((), ())),
                        preferred_element_type=jnp.float32)

    # decomposed relative-position bias, expanded (TQ,H+W)@(H+W,N) on the MXU.
    s = s + jnp.dot(rel_ref[0, 0].astype(jnp.float32), e_ref[...],
                    preferred_element_type=jnp.float32)

    # softmax over the full key axis (keys are not tiled), in f32.
    m = jnp.max(s, axis=-1, keepdims=True)
    p = jnp.exp(s - m)
    p = p / jnp.sum(p, axis=-1, keepdims=True)

    o_h = jnp.dot(p, v, preferred_element_type=jnp.float32)            # (TQ, Dh)
    contrib = jnp.dot(o_h, wp_ref[0].astype(jnp.float32),
                      preferred_element_type=jnp.float32)               # (TQ, dim)

    acc_ref[...] += contrib

    @pl.when(h == last_h)
    def _():
        o_ref[0] = (acc_ref[...] + bp_ref[...].astype(jnp.float32)).astype(o_ref.dtype)


def _get_rel_pos(size, rel_pos):
    max_rel_dist = 2 * size - 1
    # TODO(synk): the F.interpolate (linear) resize of rel_pos when its length
    # differs from 2*size-1 is parameter preprocessing and is not implemented.
    assert rel_pos.shape[0] == max_rel_dist, "rel_pos length must be 2*size-1"
    coords = jnp.arange(size)
    idx = coords[:, None] - coords[None, :] + (size - 1)
    return rel_pos[idx]                                   # (size, size, head_dim)


def _pick_q_tile(n, max_tile=512):
    if n <= max_tile:
        return n
    for cand in range(max_tile - (max_tile % 8), 7, -8):
        if n % cand == 0:
            return cand
    return n


def attention_forward(x, w_qkv, b_qkv, w_proj, b_proj, rel_pos_h, rel_pos_w,
                      *, num_heads, q_tile=512):
    """x: [B, H, W, dim] -> [B, H, W, dim], matching Attention.forward (rpe=True)."""
    B, H, W, dim = x.shape
    nh = num_heads
    Dh = dim // nh
    N = H * W
    scale = Dh ** (-0.5)

    # ---- QKV projection + head split (plain XLA GEMM) ----------------------
    qkv = jnp.einsum('bhwc,oc->bhwo', x, w_qkv) + b_qkv           # [B,H,W,3*dim]
    qkv = qkv.reshape(B, N, 3, nh, Dh).transpose(2, 0, 3, 1, 4)   # [3,B,nh,N,Dh]
    q, k, v = qkv[0], qkv[1], qkv[2]                              # each [B,nh,N,Dh]
    k = k * scale                    # fold qk scale into K (rel-pos uses unscaled q)

    # ---- decomposed rel-pos tables (small) ---------------------------------
    Rh = _get_rel_pos(H, rel_pos_h)                               # (H, H, Dh)
    Rw = _get_rel_pos(W, rel_pos_w)                               # (W, W, Dh)
    r_q = q.reshape(B, nh, H, W, Dh)
    rel_h = jnp.einsum('bnhwc,hkc->bnhwk', r_q, Rh).reshape(B, nh, N, H)
    rel_w = jnp.einsum('bnhwc,wkc->bnhwk', r_q, Rw).reshape(B, nh, N, W)
    rel = jnp.concatenate([rel_h, rel_w], axis=-1)                # (B, nh, N, H+W)

    # constant 0/1 expansion matrix:  bias(TQ,N) = [rel_h | rel_w] @ [Eh ; Ew]
    Eh = jnp.repeat(jnp.eye(H, dtype=jnp.float32), W, axis=1)     # (H, N): key kh
    Ew = jnp.tile(jnp.eye(W, dtype=jnp.float32), (1, H))          # (W, N): key kw
    E = jnp.concatenate([Eh, Ew], axis=0)                         # (H+W, N)

    # output projection pre-split per head: wp[h] = W_proj[:, h*Dh:(h+1)*Dh].T
    wp = w_proj.T.reshape(nh, Dh, dim)                            # (nh, Dh, dim)
    bp = b_proj.reshape(1, dim)

    tq = _pick_q_tile(N, q_tile)
    grid = (B, N // tq, nh)

    out_flat = pl.pallas_call(
        _attn_kernel,
        out_shape=jax.ShapeDtypeStruct((B, N, dim), x.dtype),
        grid_spec=pltpu.PrefetchScalarGridSpec(
            num_scalar_prefetch=0,
            grid=grid,
            in_specs=[
                pl.BlockSpec((1, 1, tq, Dh),    lambda b, t, h: (b, h, t, 0)),  # q
                pl.BlockSpec((1, 1, N, Dh),     lambda b, t, h: (b, h, 0, 0)),  # k (scaled)
                pl.BlockSpec((1, 1, N, Dh),     lambda b, t, h: (b, h, 0, 0)),  # v
                pl.BlockSpec((1, 1, tq, H + W), lambda b, t, h: (b, h, t, 0)),  # rel bias terms
                pl.BlockSpec((H + W, N),        lambda b, t, h: (0, 0)),        # expansion matrix
                pl.BlockSpec((1, Dh, dim),      lambda b, t, h: (h, 0, 0)),     # W_proj head slice
                pl.BlockSpec((1, dim),          lambda b, t, h: (0, 0)),        # b_proj
            ],
            out_specs=pl.BlockSpec((1, tq, dim), lambda b, t, h: (b, t, 0)),
            scratch_shapes=[pltpu.VMEM((tq, dim), jnp.float32)],
        ),
        compiler_params=pltpu.CompilerParams(
            dimension_semantics=("parallel", "parallel", "arbitrary")),
    )(q, k, v, rel, E, wp, bp)

    return out_flat.reshape(B, H, W, dim)


def _reference(x, w_qkv, b_qkv, w_proj, b_proj, rel_pos_h, rel_pos_w, *, num_heads):
    """Pure-JAX mirror of the PyTorch Attention.forward (rpe=True)."""
    B, H, W, dim = x.shape
    Dh = dim // num_heads
    N = H * W
    scale = Dh ** (-0.5)
    qkv = jnp.einsum('bhwc,oc->bhwo', x, w_qkv) + b_qkv
    qkv = qkv.reshape(B, N, 3, num_heads, Dh).transpose(2, 0, 3, 1, 4)
    qkv = qkv.reshape(3, B * num_heads, N, Dh)
    q, k, v = qkv[0], qkv[1], qkv[2]
    attn = (q * scale) @ jnp.swapaxes(k, -1, -2)                 # [BH, N, N]
    Rh = _get_rel_pos(H, rel_pos_h)
    Rw = _get_rel_pos(W, rel_pos_w)
    r_q = q.reshape(B * num_heads, H, W, Dh)
    rel_h = jnp.einsum('bhwc,hkc->bhwk', r_q, Rh)
    rel_w = jnp.einsum('bhwc,wkc->bhwk', r_q, Rw)
    attn = (attn.reshape(B * num_heads, H, W, H, W)
            + rel_h[:, :, :, :, None] + rel_w[:, :, :, None, :]
            ).reshape(B * num_heads, N, N)
    attn = jax.nn.softmax(attn, axis=-1)
    out = (attn @ v).reshape(B, num_heads, H, W, Dh)
    out = out.transpose(0, 2, 3, 1, 4).reshape(B, H, W, dim)
    return jnp.einsum('bhwc,oc->bhwo', out, w_proj) + b_proj


if __name__ == "__main__":
    key = jax.random.PRNGKey(0)
    B, input_size, dim, num_heads = 2, 8, 32, 4      # H = W = input_size, head_dim = 8
    H = W = input_size
    Dh = dim // num_heads
    ks = jax.random.split(key, 7)

    x = jax.random.normal(ks[0], (B, H, W, dim), dtype=jnp.float32)
    # nn.Linear(dim, 3*dim, bias=True): weight (3*dim, dim), bias (3*dim,)
    w_qkv = 0.1 * jax.random.normal(ks[1], (3 * dim, dim), dtype=jnp.float32)
    b_qkv = 0.1 * jax.random.normal(ks[2], (3 * dim,), dtype=jnp.float32)
    # nn.Linear(dim, dim): weight (dim, dim), bias (dim,)
    w_proj = 0.1 * jax.random.normal(ks[3], (dim, dim), dtype=jnp.float32)
    b_proj = 0.1 * jax.random.normal(ks[4], (dim,), dtype=jnp.float32)
    # rel_pos_h / rel_pos_w: (2*input_size - 1, head_dim), trunc_normal std=0.02
    rel_pos_h = 0.02 * jax.random.normal(ks[5], (2 * input_size - 1, Dh), dtype=jnp.float32)
    rel_pos_w = 0.02 * jax.random.normal(ks[6], (2 * input_size - 1, Dh), dtype=jnp.float32)

    out = attention_forward(x, w_qkv, b_qkv, w_proj, b_proj,
                            rel_pos_h, rel_pos_w, num_heads=num_heads)
    out = jax.block_until_ready(out)

    ref = _reference(x, w_qkv, b_qkv, w_proj, b_proj,
                     rel_pos_h, rel_pos_w, num_heads=num_heads)
    assert out.shape == (B, H, W, dim), out.shape
    max_err = float(jnp.max(jnp.abs(out - ref)))
    assert jnp.allclose(out, ref, atol=2e-2, rtol=2e-2), max_err

    print("KERNEL_OK")
</pallas_src>

<mosaic_0001>
module attributes {stable_mosaic.version = 11 : i64} {
  func.func @_attn_kernel(%arg0: i32, %arg1: i32, %arg2: i32, %arg3: memref<1x1x64x8xf32, #tpu.memory_space<vmem>>, %arg4: memref<1x1x64x8xf32, #tpu.memory_space<vmem>>, %arg5: memref<1x1x64x8xf32, #tpu.memory_space<vmem>>, %arg6: memref<1x1x64x16xf32, #tpu.memory_space<vmem>>, %arg7: memref<16x64xf32, #tpu.memory_space<vmem>>, %arg8: memref<1x8x32xf32, #tpu.memory_space<vmem>>, %arg9: memref<1x32xf32, #tpu.memory_space<vmem>>, %arg10: memref<1x64x32xf32, #tpu.memory_space<vmem>>, %arg11: memref<64x32xf32, #tpu.memory_space<vmem>>) attributes {dimension_semantics = [#tpu.dimension_semantics<parallel>, #tpu.dimension_semantics<parallel>, #tpu.dimension_semantics<arbitrary>], iteration_bounds = array<i64: 2, 1, 4>, scalar_prefetch = 0 : i64, scratch_operands = 1 : i64, tpu.core_type = #tpu.core_type<tc>, window_params = [{transform_indices = @transform_0, window_bounds = array<i64: 1, 1, 64, 8>}, {transform_indices = @transform_1, window_bounds = array<i64: 1, 1, 64, 8>}, {transform_indices = @transform_2, window_bounds = array<i64: 1, 1, 64, 8>}, {transform_indices = @transform_3, window_bounds = array<i64: 1, 1, 64, 16>}, {pipeline_mode = #tpu.pipeline_mode<synchronous>, transform_indices = @transform_4, window_bounds = array<i64: 16, 64>}, {transform_indices = @transform_5, window_bounds = array<i64: 1, 8, 32>}, {pipeline_mode = #tpu.pipeline_mode<synchronous>, transform_indices = @transform_6, window_bounds = array<i64: 1, 32>}, {transform_indices = @transform_7, window_bounds = array<i64: 1, 64, 32>}]} {
    %c0_i32 = arith.constant 0 : i32
    %0 = arith.cmpi eq, %arg2, %c0_i32 : i32
    %1 = arith.extui %0 : i1 to i32
    %c0_i32_0 = arith.constant 0 : i32
    %2 = arith.cmpi ne, %1, %c0_i32_0 : i32
    scf.if %2 {
      %cst_31 = arith.constant 0.000000e+00 : f32
      %34 = vector.broadcast %cst_31 : f32 to vector<64x32xf32>
      %c0_32 = arith.constant 0 : index
      %c0_33 = arith.constant 0 : index
      %35 = vector.load %arg11[%c0_32, %c0_33] : memref<64x32xf32, #tpu.memory_space<vmem>>, vector<64x32xf32>
      tpu.vector_store %arg11[%c0_32, %c0_33], %34 {strides = array<i32>} : memref<64x32xf32, #tpu.memory_space<vmem>>, vector<64x32xf32>,
    } else {
    }
    %c0 = arith.constant 0 : index
    %c0_1 = arith.constant 0 : index
    %c0_2 = arith.constant 0 : index
    %c0_3 = arith.constant 0 : index
    %3 = vector.load %arg3[%c0, %c0_1, %c0_2, %c0_3] : memref<1x1x64x8xf32, #tpu.memory_space<vmem>>, vector<1x1x64x8xf32>
    %4 = vector.shape_cast %3 : vector<1x1x64x8xf32> to vector<64x8xf32>
    %c0_4 = arith.constant 0 : index
    %c0_5 = arith.constant 0 : index
    %c0_6 = arith.constant 0 : index
    %c0_7 = arith.constant 0 : index
    %5 = vector.load %arg4[%c0_4, %c0_5, %c0_6, %c0_7] : memref<1x1x64x8xf32, #tpu.memory_space<vmem>>, vector<1x1x64x8xf32>
    %6 = vector.shape_cast %5 : vector<1x1x64x8xf32> to vector<64x8xf32>
    %c0_8 = arith.constant 0 : index
    %c0_9 = arith.constant 0 : index
    %c0_10 = arith.constant 0 : index
    %c0_11 = arith.constant 0 : index
    %7 = vector.load %arg5[%c0_8, %c0_9, %c0_10, %c0_11] : memref<1x1x64x8xf32, #tpu.memory_space<vmem>>, vector<1x1x64x8xf32>
    %8 = vector.shape_cast %7 : vector<1x1x64x8xf32> to vector<64x8xf32>
    %cst = arith.constant dense<0.000000e+00> : vector<64x64xf32>
    %9 = tpu.matmul %4, %6, %cst {dimension_numbers = #tpu.dot_dimension_numbers<[1], [1], [0], [0], [0, 0, 1, 0], [], []>} : vector<64x8xf32>, vector<64x8xf32>, vector<64x64xf32> -> vector<64x64xf32>
    %c0_12 = arith.constant 0 : index
    %c0_13 = arith.constant 0 : index
    %c0_14 = arith.constant 0 : index
    %c0_15 = arith.constant 0 : index
    %10 = vector.load %arg6[%c0_12, %c0_13, %c0_14, %c0_15] : memref<1x1x64x16xf32, #tpu.memory_space<vmem>>, vector<1x1x64x16xf32>
    %11 = vector.shape_cast %10 : vector<1x1x64x16xf32> to vector<64x16xf32>
    %c0_16 = arith.constant 0 : index
    %c0_17 = arith.constant 0 : index
    %12 = vector.load %arg7[%c0_16, %c0_17] : memref<16x64xf32, #tpu.memory_space<vmem>>, vector<16x64xf32>
    %cst_18 = arith.constant dense<0.000000e+00> : vector<64x64xf32>
    %13 = tpu.matmul %11, %12, %cst_18 {dimension_numbers = #tpu.dot_dimension_numbers<[1], [0], [0], [1], [0, 0, 1, 1], [], []>} : vector<64x16xf32>, vector<16x64xf32>, vector<64x64xf32> -> vector<64x64xf32>
    %14 = arith.addf %9, %13 : vector<64x64xf32>
    %cst_19 = arith.constant dense<0xFF800000> : vector<64xf32>
    %15 = vector.multi_reduction <maximumf>, %14, %cst_19 [1] : vector<64x64xf32> to vector<64xf32>
    %16 = vector.shape_cast %15 : vector<64xf32> to vector<64x1xf32>
    %17 = vector.broadcast %16 : vector<64x1xf32> to vector<64x64xf32>
    %18 = arith.subf %14, %17 : vector<64x64xf32>
    %19 = math.exp %18 : vector<64x64xf32>
    %cst_20 = arith.constant dense<0.000000e+00> : vector<64xf32>
    %20 = vector.multi_reduction <add>, %19, %cst_20 [1] : vector<64x64xf32> to vector<64xf32>
    %21 = vector.shape_cast %20 : vector<64xf32> to vector<64x1xf32>
    %22 = vector.broadcast %21 : vector<64x1xf32> to vector<64x64xf32>
    %23 = arith.divf %19, %22 : vector<64x64xf32>
    %cst_21 = arith.constant dense<0.000000e+00> : vector<64x8xf32>
    %24 = tpu.matmul %23, %8, %cst_21 {dimension_numbers = #tpu.dot_dimension_numbers<[1], [0], [0], [1], [0, 0, 1, 1], [], []>} : vector<64x64xf32>, vector<64x8xf32>, vector<64x8xf32> -> vector<64x8xf32>
    %c0_22 = arith.constant 0 : index
    %c0_23 = arith.constant 0 : index
    %c0_24 = arith.constant 0 : index
    %25 = vector.load %arg8[%c0_22, %c0_23, %c0_24] : memref<1x8x32xf32, #tpu.memory_space<vmem>>, vector<1x8x32xf32>
    %26 = vector.shape_cast %25 : vector<1x8x32xf32> to vector<8x32xf32>
    %cst_25 = arith.constant dense<0.000000e+00> : vector<64x32xf32>
    %27 = tpu.matmul %24, %26, %cst_25 {dimension_numbers = #tpu.dot_dimension_numbers<[1], [0], [0], [1], [0, 0, 1, 1], [], []>} : vector<64x8xf32>, vector<8x32xf32>, vector<64x32xf32> -> vector<64x32xf32>
    %c0_26 = arith.constant 0 : index
    %c0_27 = arith.constant 0 : index
    %28 = vector.load %arg11[%c0_26, %c0_27] : memref<64x32xf32, #tpu.memory_space<vmem>>, vector<64x32xf32>
    %29 = arith.addf %28, %27 : vector<64x32xf32>
    %c0_28 = arith.constant 0 : index
    %c0_29 = arith.constant 0 : index
    %30 = vector.load %arg11[%c0_28, %c0_29] : memref<64x32xf32, #tpu.memory_space<vmem>>, vector<64x32xf32>
    tpu.vector_store %arg11[%c0_28, %c0_29], %29 {strides = array<i32>} : memref<64x32xf32, #tpu.memory_space<vmem>>, vector<64x32xf32>,
    %c3_i32 = arith.constant 3 : i32
    %31 = arith.cmpi eq, %arg2, %c3_i32 : i32
    %32 = arith.extui %31 : i1 to i32
    %c0_i32_30 = arith.constant 0 : i32
    %33 = arith.cmpi ne, %32, %c0_i32_30 : i32
    scf.if %33 {
      %c0_31 = arith.constant 0 : index
      %c0_32 = arith.constant 0 : index
      %34 = vector.load %arg11[%c0_31, %c0_32] : memref<64x32xf32, #tpu.memory_space<vmem>>, vector<64x32xf32>
      %c0_33 = arith.constant 0 : index
      %c0_34 = arith.constant 0 : index
      %35 = vector.load %arg9[%c0_33, %c0_34] : memref<1x32xf32, #tpu.memory_space<vmem>>, vector<1x32xf32>
      %36 = vector.broadcast %35 : vector<1x32xf32> to vector<64x32xf32>
      %37 = arith.addf %34, %36 : vector<64x32xf32>
      %c0_35 = arith.constant 0 : index
      %c0_36 = arith.constant 0 : index
      %c0_37 = arith.constant 0 : index
      %38 = vector.load %arg10[%c0_35, %c0_36, %c0_37] : memref<1x64x32xf32, #tpu.memory_space<vmem>>, vector<1x64x32xf32>
      %39 = vector.shape_cast %38 : vector<1x64x32xf32> to vector<64x32xf32>
      %40 = vector.shape_cast %37 : vector<64x32xf32> to vector<1x64x32xf32>
      tpu.vector_store %arg10[%c0_35, %c0_36, %c0_37], %40 {strides = array<i32>} : memref<1x64x32xf32, #tpu.memory_space<vmem>>, vector<1x64x32xf32>,
    } else {
    }
    return
  }
  func.func @transform_0(%arg0: i32, %arg1: i32, %arg2: i32) -> (i32, i32, i32, i32) {
    %c0_i32 = arith.constant 0 : i32
    %c0_i32_0 = arith.constant 0 : i32
    return %arg0, %arg2, %arg1, %c0_i32 : i32, i32, i32, i32
  }
  func.func @transform_1(%arg0: i32, %arg1: i32, %arg2: i32) -> (i32, i32, i32, i32) {
    %c0_i32 = arith.constant 0 : i32
    %c0_i32_0 = arith.constant 0 : i32
    %c0_i32_1 = arith.constant 0 : i32
    return %arg0, %arg2, %c0_i32, %c0_i32_0 : i32, i32, i32, i32
  }
  func.func @transform_2(%arg0: i32, %arg1: i32, %arg2: i32) -> (i32, i32, i32, i32) {
    %c0_i32 = arith.constant 0 : i32
    %c0_i32_0 = arith.constant 0 : i32
    %c0_i32_1 = arith.constant 0 : i32
    return %arg0, %arg2, %c0_i32, %c0_i32_0 : i32, i32, i32, i32
  }
  func.func @transform_3(%arg0: i32, %arg1: i32, %arg2: i32) -> (i32, i32, i32, i32) {
    %c0_i32 = arith.constant 0 : i32
    %c0_i32_0 = arith.constant 0 : i32
    return %arg0, %arg2, %arg1, %c0_i32 : i32, i32, i32, i32
  }
  func.func @transform_4(%arg0: i32, %arg1: i32, %arg2: i32) -> (i32, i32) {
    %c0_i32 = arith.constant 0 : i32
    %c0_i32_0 = arith.constant 0 : i32
    %c0_i32_1 = arith.constant 0 : i32
    return %c0_i32, %c0_i32_0 : i32, i32
  }
  func.func @transform_5(%arg0: i32, %arg1: i32, %arg2: i32) -> (i32, i32, i32) {
    %c0_i32 = arith.constant 0 : i32
    %c0_i32_0 = arith.constant 0 : i32
    %c0_i32_1 = arith.constant 0 : i32
    return %arg2, %c0_i32, %c0_i32_0 : i32, i32, i32
  }
  func.func @transform_6(%arg0: i32, %arg1: i32, %arg2: i32) -> (i32, i32) {
    %c0_i32 = arith.constant 0 : i32
    %c0_i32_0 = arith.constant 0 : i32
    %c0_i32_1 = arith.constant 0 : i32
    return %c0_i32, %c0_i32_0 : i32, i32
  }
  func.func @transform_7(%arg0: i32, %arg1: i32, %arg2: i32) -> (i32, i32, i32) {
    %c0_i32 = arith.constant 0 : i32
    %c0_i32_0 = arith.constant 0 : i32
    return %arg0, %arg1, %c0_i32 : i32, i32, i32
  }
}

</mosaic_0001>

<bundles_post_ra>
// kernel: tpu_custom_call.1
= control target key start
LH: loop header
LB: loop body
LE: loop exit
PB: predicated region body
PF: predicated region fallthrough
CT: control target
= control target key end

     0   :  { %s1455_s24 = smov 0   ;;  %s1457_s25 = smov 0   ;;  %s1690_s0 = inlined_call_operand.vmem [shape: f32[2,4,64,8], index: 0, kind: input, shape index: {}]   ;;  %s1691_s1 = inlined_call_operand.vmem [shape: f32[2,4,64,8], index: 1, kind: input, shape index: {}]   ;;  %s1692_s2 = inlined_call_operand.vmem [shape: f32[2,4,64,8], index: 2, kind: input, shape index: {}]   ;;  %s1693_s3 = inlined_call_operand.vmem [shape: f32[2,4,64,16], index: 3, kind: input, shape index: {}]   ;;  %s1694_s4 = inlined_call_operand.vmem [shape: f32[16,64], index: 4, kind: input, shape index: {}]   ;;  %s1695_s5 = inlined_call_operand.vmem [shape: f32[4,8,32], index: 5, kind: input, shape index: {}]   ;;  %s1696_s6 = inlined_call_operand.vmem [shape: f32[1,32], index: 6, kind: input, shape index: {}]   ;;  %s1697_s7 = inlined_call_operand.vmem [shape: f32[2,64,32], index: 7, kind: output, shape index: {}]  }
   0x1   :  { %s1459_s26 = smov 0   ;;  %s1461_s27 = smov 0  }
   0x2   :  { %s1463_s28 = smov 0  }
   0x3 LB: > { %s29_s29 = sadd.s32 1, %s1404_s26  ;;  %s36_s30 = sadd.s32 1, %s1408_s27  ;;  %s1412_s28 = sphi %s1463_s28, %s17_s28   ;;  %s1408_s27 = sphi %s1461_s27, %s1701_s27   ;;  %s1404_s26 = sphi %s1459_s26, %s1700_s26   ;;  %s1400_s25 = sphi %s1457_s25, %s1699_s25   ;;  %s1396_s24 = sphi %s1455_s24, %s1698_s24  }
   0x4   : > { %p30_p0 = scmp.ge.s32.totalorder %s29_s29, 4  ;;  %p1239_p1 = scmp.ge.s32.totalorder %s1412_s28, 1 }
   0x5   : > { %p335_p2 = scmp.lt.s32.totalorder %s1412_s28, 9 }
   0x6   : > { %s1703_s29 = smov (%p30_p0, %s29_s29), 0  ;;  %s1705_s30 = smov (!%p30_p0, %s36_s30), %s1408_s27 }
   0x7   : > { %p336_p3 = pnand %p1239_p1, %p335_p2  ;;  %p38_p4 = scmp.ge.s32.totalorder %s1705_s30, 2 }
   0x8   : > { %p415_p5 = scmp.lt.s32.totalorder (!%p336_p3), %s1400_s25, 1  ;;  %p417_p6 = scmp.lt.s32.totalorder (!%p336_p3), %s1396_s24, 3 }
   0x9   : > { %s1707_s30 = smov (%p38_p4, %s1705_s30), 0  ;;  %339 = sbr.rel (%p336_p3) target bundleno = 792 (0x318), region = 48 }
   0xa   : > { %p1255_p7 = scmp.ne.s32.totalorder (!%p336_p3), %s1396_s24, 0 }
   0xe   : > { %s1709_s25 = smov (!%p415_p5, %s1400_s25), 1 }
   0xf   : > { %s418_s8 = scalar_select %p417_p6, %s1396_s24, 3 }
  0x10   : > { %s1241_s9 = sshll.u32 %s1709_s25, 5  ;;  %s1299_s10 = sshll.u32 %s1709_s25, 6 }
  0x11   : > { %s1240_s11 = sshll.u32 %s418_s8, 3  ;;  %s1492_s14 = scalar_lea.vmem %s1697_s7, %s1299_s10 }
  0x12   : > { %s424_s15 = sadd.s32 %s1241_s9, %s1240_s11  ;;  %s1497_s18 = scalar_lea.vmem %s1695_s5, %s1240_s11 }
  0x13   : > { %s1242_s19 = sshll.u32 %s424_s15, 3  ;;  %477 = sbr.rel (%p1255_p7) target bundleno = 33 (0x21), region = 52 }
  0x14   : > { %s1502_s22 = scalar_lea.vmem %s1690_s0, %s1242_s19  ;;  %s1507_s8 = scalar_lea.vmem %s1691_s1, %s1242_s19 }
  0x15   : > { %s1512_s9 = scalar_lea.vmem %s1692_s2, %s1242_s19  ;;  %s1517_s11 = scalar_lea.vmem %s1693_s3, %s1242_s19 }
  0x18   : > { %vm478_vm0 = vcmask 261120   ;;  %v1414_v0 = vmov 0.0  }
  0x19   : > { %479 = vst.msk [vmem:[#allocation2] sm:$0xff] %vm478_vm0, %v1414_v0 }
  0x1a   : > { %480 = vst.msk [vmem:[#allocation2 + $0x8] sm:$0xff] %vm478_vm0, %v1414_v0 }
  0x1b   : > { %481 = vst.msk [vmem:[#allocation2 + $0x10] sm:$0xff] %vm478_vm0, %v1414_v0 }
  0x1c   : > { %482 = vst.msk [vmem:[#allocation2 + $0x18] sm:$0xff] %vm478_vm0, %v1414_v0 }
  0x1d   : > { %483 = vst.msk [vmem:[#allocation2 + $0x20] sm:$0xff] %vm478_vm0, %v1414_v0 }
  0x1e   : > { %484 = vst.msk [vmem:[#allocation2 + $0x28] sm:$0xff] %vm478_vm0, %v1414_v0 }
  0x1f   : > { %485 = vst.msk [vmem:[#allocation2 + $0x30] sm:$0xff] %vm478_vm0, %v1414_v0 }
  0x20   : > { %486 = vst.msk [vmem:[#allocation2 + $0x38] sm:$0xff] %vm478_vm0, %v1414_v0 }
  0x21 PF: > { %v502_v1 = vld [vmem:[%s1507_s8 + $0x38] sm:$0xff]  ;;  %vm587_vm1 = vcmask 64512   ;;  %v501_v2 = vld [vmem:[%s1507_s8 + $0x30] sm:$0xff]  ;;  %v520_v3 = vld [vmem:[%s1694_s4 + $0x8] sm:$0xff]  ;;  %vm521_vm2 = vcmask 130048   ;;  %vm677_vm3 = vcmask 523264  }
  0x22   : > { %1264 = vmatpush.xpose.msk.msra.mxu1 %vm587_vm1, %v502_v1  ;;  %560 = vmatpush.msra.mxu0 %v520_v3  ;;  %v519_v4 = vld [vmem:[%s1694_s4] sm:$0xff]  ;;  %v500_v6 = vld [vmem:[%s1507_s8 + $0x28] sm:$0xff]  ;;  %v498_v9 = vld [vmem:[%s1507_s8 + $0x18] sm:$0xff]  ;;  %p1296_p8 = scmp.ne.s32.totalorder %s1396_s24, 3 }
  0x23   : > { %v511_v5 = vld [vmem:[%s1517_s11] sm:$0xff]  ;;  %v512_v8 = vld [vmem:[%s1517_s11 + $0x8] sm:$0xff]  ;;  %v497_v10 = vld [vmem:[%s1507_s8 + $0x10] sm:$0xff] }
  0x24   : > { %561 = vmatpush.msra.mxu0 %v519_v4  ;;  %v499_v7 = vld [vmem:[%s1507_s8 + $0x20] sm:$0xff]  ;;  %v513_v11 = vld [vmem:[%s1517_s11 + $0x10] sm:$0xff]  ;;  %v496_v12 = vld [vmem:[%s1507_s8 + $0x8] sm:$0xff] }
  0x25   : > { %1256 = vmatmul.msk.f32.vlgmr.msra.gmra.mxu0 %vm521_vm2, %v511_v5  ;;  %v495_v13 = vld [vmem:[%s1507_s8] sm:$0xff]  ;;  %v514_v14 = vld [vmem:[%s1517_s11 + $0x18] sm:$0xff]  ;;  %v488_v17 = vld [vmem:[%s1502_s22 + $0x8] sm:$0xff] }
  0x26   : > { %1265 = vmatpush.xpose.msk.msra.mxu1 %vm587_vm1, %v501_v2  ;;  %v487_v15 = vld [vmem:[%s1502_s22] sm:$0xff]  ;;  %v516_v18 = vld [vmem:[%s1517_s11 + $0x28] sm:$0xff]  ;;  %v489_v19 = vld [vmem:[%s1502_s22 + $0x10] sm:$0xff] }
  0x27   : > { %v515_v16 = vld [vmem:[%s1517_s11 + $0x20] sm:$0xff]  ;;  %v517_v20 = vld [vmem:[%s1517_s11 + $0x30] sm:$0xff]  ;;  %v490_v21 = vld [vmem:[%s1502_s22 + $0x18] sm:$0xff] }
  0x28   : > { %v518_v22 = vld [vmem:[%s1517_s11 + $0x38] sm:$0xff]  ;;  %v491_v23 = vld [vmem:[%s1502_s22 + $0x20] sm:$0xff]  ;;  %v492_v24 = vld [vmem:[%s1502_s22 + $0x28] sm:$0xff] }
  0x29   : > { %v493_v25 = vld [vmem:[%s1502_s22 + $0x30] sm:$0xff]  ;;  %v494_v26 = vld [vmem:[%s1502_s22 + $0x38] sm:$0xff] }
  0x2a   : > { %1266 = vmatpush.xpose.msk.msra.mxu1 %vm587_vm1, %v500_v6 }
  0x2d   : > { %1257 = vmatmul.msk.f32.gmra.mxu0 %vm521_vm2, %v512_v8 }
  0x2e   : > { %1267 = vmatpush.xpose.msk.msra.mxu1 %vm587_vm1, %v499_v7 }
  0x32   : > { %1268 = vmatpush.xpose.msk.msra.mxu1 %vm587_vm1, %v498_v9 }
  0x35   : > { %1258 = vmatmul.msk.f32.gmra.mxu0 %vm521_vm2, %v513_v11 }
  0x36   : > { %1269 = vmatpush.xpose.msk.msra.mxu1 %vm587_vm1, %v497_v10 }
  0x3a   : > { %1270 = vmatpush.xpose.msk.msra.mxu1 %vm587_vm1, %v496_v12 }
  0x3d   : > { %1259 = vmatmul.msk.f32.gmra.mxu0 %vm521_vm2, %v514_v14 }
  0x3e   : > { %1271 = vmatpush.xpose.msk.msra.mxu1 %vm587_vm1, %v495_v13 }
  0x41   : > { %1272 = vmatmul.msk.f32.vlgmr.msra.gmra.mxu1 %vm587_vm1, %v487_v15 }
  0x45   : > { %1260 = vmatmul.msk.f32.gmra.mxu0 %vm521_vm2, %v515_v16 }
  0x49   : > { %1273 = vmatmul.msk.f32.gmra.mxu1 %vm587_vm1, %v488_v17 }
  0x4d   : > { %1261 = vmatmul.msk.f32.gmra.mxu0 %vm521_vm2, %v516_v18 }
  0x51   : > { %1274 = vmatmul.msk.f32.gmra.mxu1 %vm587_vm1, %v489_v19 }
  0x55   : > { %1262 = vmatmul.msk.f32.gmra.mxu0 %vm521_vm2, %v517_v20 }
  0x59   : > { %1275 = vmatmul.msk.f32.gmra.mxu1 %vm587_vm1, %v490_v21 }
  0x5d   : > { %1263 = vmatmul.msk.f32.gmra.mxu0 %vm521_vm2, %v518_v22 }
  0x61   : > { %1276 = vmatmul.msk.f32.gmra.mxu1 %vm587_vm1, %v491_v23 }
  0x69   : > { %1277 = vmatmul.msk.f32.gmra.mxu1 %vm587_vm1, %v492_v24 }
  0x71   : > { %1278 = vmatmul.msk.f32.gmra.mxu1 %vm587_vm1, %v493_v25 }
  0x79   : > { %1279 = vmatmul.msk.f32.gmra.mxu1 %vm587_vm1, %v494_v26 }
  0xa2   : > { %v563_v27 = vpop.f32.mrf.mxu0 }
  0xaa   : > { %v566_v28 = vpop.f32.mrf.mxu0 }
  0xb2   : > { %v569_v32 = vpop.f32.mrf.mxu0 }
  0xba   : > { %v572_v36 = vpop.f32.mrf.mxu0 }
  0xbe   : > { %v653_v29 = vpop.f32.mrf.mxu1 }
  0xbf   : > { %v654_v30 = vadd.f32 %v653_v29, %v563_v27 }
  0xc1   : > { %v678_v31 = vsel %vm677_vm3, %v654_v30, -inf }
  0xc2   : > { %679 = vmax.xlane.f32.xlu0 %v678_v31  ;;  %v575_v41 = vpop.f32.mrf.mxu0 }
  0xc6   : > { %v656_v33 = vpop.f32.mrf.mxu1 }
  0xc7   : > { %v657_v34 = vadd.f32 %v656_v33, %v566_v28 }
  0xc9   : > { %v681_v35 = vsel %vm677_vm3, %v657_v34, -inf }
  0xca   : > { %682 = vmax.xlane.f32.xlu0 %v681_v35  ;;  %v578_v46 = vpop.f32.mrf.mxu0  ;;  %v510_v35 = vld [vmem:[%s1512_s9 + $0x38] sm:$0xff] }
  0xcb   : > { %902 = vmatpush.msra.mxu2 %v510_v35 }
  0xce   : > { %v659_v37 = vpop.f32.mrf.mxu1 }
  0xcf   : > { %v660_v38 = vadd.f32 %v659_v37, %v569_v32  ;;  %v508_v37 = vld [vmem:[%s1512_s9 + $0x28] sm:$0xff] }
  0xd1   : > { %v684_v39 = vsel %vm677_vm3, %v660_v38, -inf }
  0xd2   : > { %685 = vmax.xlane.f32.xlu1 %v684_v39  ;;  %v581_v51 = vpop.f32.mrf.mxu0  ;;  %v506_v39 = vld [vmem:[%s1512_s9 + $0x18] sm:$0xff] }
  0xd6   : > { %v662_v40 = vpop.f32.mrf.mxu1 }
  0xd7   : > { %v663_v42 = vadd.f32 %v662_v40, %v572_v36  ;;  %v509_v36 = vld [vmem:[%s1512_s9 + $0x30] sm:$0xff] }
  0xd8   : > { %903 = vmatpush.msra.mxu2 %v509_v36  ;;  %v505_v40 = vld [vmem:[%s1512_s9 + $0x10] sm:$0xff] }
  0xd9   : > { %v687_v43 = vsel %vm677_vm3, %v663_v42, -inf }
  0xda   : > { %688 = vmax.xlane.f32.xlu1 %v687_v43  ;;  %v584_v55 = vpop.f32.mrf.mxu0  ;;  %904 = vmatpush.msra.mxu2 %v508_v37 }
  0xde   : > { %v665_v44 = vpop.f32.mrf.mxu1 }
  0xdf   : > { %v666_v45 = vadd.f32 %v665_v44, %v575_v41  ;;  %v504_v41 = vld [vmem:[%s1512_s9 + $0x8] sm:$0xff] }
  0xe1   : > { %v690_v47 = vsel %vm677_vm3, %v666_v45, -inf }
  0xe2   : > { %691 = vmax.xlane.f32.xlu2 %v690_v47 }
  0xe6   : > { %v668_v48 = vpop.f32.mrf.mxu1 }
  0xe7   : > { %v669_v49 = vadd.f32 %v668_v48, %v578_v46 }
  0xe9   : > { %v693_v50 = vsel %vm677_vm3, %v669_v49, -inf }
  0xea   : > { %694 = vmax.xlane.f32.xlu2 %v693_v50 }
  0xee   : > { %v671_v52 = vpop.f32.mrf.mxu1 }
  0xef   : > { %v672_v53 = vadd.f32 %v671_v52, %v581_v51 }
  0xf1   : > { %v696_v54 = vsel %vm677_vm3, %v672_v53, -inf }
  0xf2   : > { %697 = vmax.xlane.f32.xlu0 %v696_v54 }
  0xf6   : > { %v674_v56 = vpop.f32.mrf.mxu1 }
  0xf7   : > { %v675_v57 = vadd.f32 %v674_v56, %v584_v55 }
  0xf9   : > { %v699_v58 = vsel %vm677_vm3, %v675_v57, -inf }
  0xfa   : > { %700 = vmax.xlane.f32.xlu2 %v699_v58 }
 0x135   : > { %v680_v59 = vpop.xlane.xlu0 %679 }
 0x136   : > { %v702_v60 = vsub.f32 %v654_v30, %v680_v59 }
 0x138   : > { %v710_v61 = vmul.f32 1.442695, %v702_v60 }
 0x13a   : > { %1341 = vpow2.f32 %v710_v61 }
 0x13d   : > { %v683_v62 = vpop.xlane.xlu0 %682 }
 0x13e   : > { %v703_v63 = vsub.f32 %v657_v34, %v683_v62 }
 0x140   : > { %v1582_v0 = vpop.eup %1341  ;;  %v712_v1 = vmul.f32 1.442695, %v703_v63 }
 0x141   : > { %v726_v2 = vsel %vm677_vm3, %v1582_v0, 0.0 }
 0x142   : > { %1343 = vpow2.f32 %v712_v1  ;;  %727 = vadd.xlane.f32.xlu1 %v726_v2 }
 0x145   : > { %v686_v3 = vpop.xlane.xlu1 %685 }
 0x146   : > { %v704_v4 = vsub.f32 %v660_v38, %v686_v3  ;;  %v507_v38 = vld [vmem:[%s1512_s9 + $0x20] sm:$0xff] }
 0x147   : > { %905 = vmatpush.msra.mxu2 %v507_v38 }
 0x148   : > { %v1586_v5 = vpop.eup %1343  ;;  %v714_v6 = vmul.f32 1.442695, %v704_v4 }
 0x149   : > { %v729_v7 = vsel %vm677_vm3, %v1586_v5, 0.0  ;;  %906 = vmatpush.msra.mxu2 %v506_v39 }
 0x14a   : > { %1345 = vpow2.f32 %v714_v6  ;;  %730 = vadd.xlane.f32.xlu0 %v729_v7 }
 0x14b   : > { %907 = vmatpush.msra.mxu2 %v505_v40 }
 0x14d   : > { %v689_v8 = vpop.xlane.xlu1 %688  ;;  %908 = vmatpush.msra.mxu2 %v504_v41 }
 0x14e   : > { %v705_v9 = vsub.f32 %v663_v42, %v689_v8  ;;  %v503_v42 = vld [vmem:[%s1512_s9] sm:$0xff] }
 0x14f   : > { %909 = vmatpush.msra.mxu2 %v503_v42 }
 0x150   : > { %v1590_v10 = vpop.eup %1345  ;;  %v716_v11 = vmul.f32 1.442695, %v705_v9 }
 0x151   : > { %v732_v12 = vsel %vm677_vm3, %v1590_v10, 0.0 }
 0x152   : > { %1347 = vpow2.f32 %v716_v11  ;;  %733 = vadd.xlane.f32.xlu1 %v732_v12 }
 0x155   : > { %v692_v13 = vpop.xlane.xlu2 %691 }
 0x156   : > { %v706_v14 = vsub.f32 %v666_v45, %v692_v13 }
 0x158   : > { %v1594_v15 = vpop.eup %1347  ;;  %v718_v16 = vmul.f32 1.442695, %v706_v14 }
 0x159   : > { %v735_v17 = vsel %vm677_vm3, %v1594_v15, 0.0 }
 0x15a   : > { %1349 = vpow2.f32 %v718_v16  ;;  %736 = vadd.xlane.f32.xlu2 %v735_v17 }
 0x15d   : > { %v695_v18 = vpop.xlane.xlu2 %694 }
 0x15e   : > { %v707_v19 = vsub.f32 %v669_v49, %v695_v18 }
 0x160   : > { %v1598_v20 = vpop.eup %1349  ;;  %v720_v21 = vmul.f32 1.442695, %v707_v19 }
 0x161   : > { %v738_v22 = vsel %vm677_vm3, %v1598_v20, 0.0 }
 0x162   : > { %1351 = vpow2.f32 %v720_v21  ;;  %739 = vadd.xlane.f32.xlu0 %v738_v22 }
 0x165   : > { %v698_v23 = vpop.xlane.xlu0 %697 }
 0x166   : > { %v708_v24 = vsub.f32 %v672_v53, %v698_v23 }
 0x168   : > { %v1602_v25 = vpop.eup %1351  ;;  %v722_v26 = vmul.f32 1.442695, %v708_v24 }
 0x169   : > { %v741_v27 = vsel %vm677_vm3, %v1602_v25, 0.0 }
 0x16a   : > { %1353 = vpow2.f32 %v722_v26  ;;  %742 = vadd.xlane.f32.xlu1 %v741_v27 }
 0x16d   : > { %v701_v28 = vpop.xlane.xlu2 %700 }
 0x16e   : > { %v709_v29 = vsub.f32 %v675_v57, %v701_v28 }
 0x170   : > { %v1606_v30 = vpop.eup %1353  ;;  %v724_v31 = vmul.f32 1.442695, %v709_v29 }
 0x171   : > { %v744_v32 = vsel %vm677_vm3, %v1606_v30, 0.0 }
 0x172   : > { %1355 = vpow2.f32 %v724_v31  ;;  %745 = vadd.xlane.f32.xlu2 %v744_v32 }
 0x178   : > { %v1610_v33 = vpop.eup %1355 }
 0x179   : > { %v747_v34 = vsel %vm677_vm3, %v1610_v33, 0.0 }
 0x17a   : > { %748 = vadd.xlane.f32.xlu0 %v747_v34 }
 0x1b5   : > { %v728_v43 = vpop.xlane.xlu1 %727 }
 0x1b6   : > { %1357 = vrcp.f32 %v728_v43  ;;  %v761_v48 = vand.u32 2147483648, %v728_v43  ;;  %v759_v50 = vand.u32 2147483647, %v728_v43  ;;  %vm755_vm5 = vweird.f32 %v728_v43 }
 0x1b8   : > { %v762_v53 = vor.u32 1.1754944e-38, %v761_v48  ;;  %vm760_vm7 = vcmp.eq.f32.partialorder %v759_v50, 8.507059e+37 }
 0x1bc   : > { %v1358_v44 = vpop.eup %1357 }
 0x1bd   : > { %v751_v45 = vmul.f32 %v1358_v44, %v728_v43  ;;  %v731_v46 = vpop.xlane.xlu0 %730  ;;  %vm756_vm4 = vweird.f32 %v1358_v44 }
 0x1be   : > { %1359 = vrcp.f32 %v731_v46  ;;  %vm757_vm6 = vmor %vm755_vm5, %vm756_vm4  ;;  %v776_v60 = vand.u32 2147483648, %v731_v46  ;;  %v774_v62 = vand.u32 2147483647, %v731_v46  ;;  %vm770_vm9 = vweird.f32 %v731_v46 }
 0x1bf   : > { %v752_v47 = vsub.f32 1.0, %v751_v45 }
 0x1c0   : > { %v777_v2 = vor.u32 1.1754944e-38, %v776_v60  ;;  %vm775_vm11 = vcmp.eq.f32.partialorder %v774_v62, 8.507059e+37 }
 0x1c1   : > { %v753_v49 = vmul.f32 %v1358_v44, %v752_v47 }
 0x1c3   : > { %v754_v51 = vadd.f32 %v1358_v44, %v753_v49 }
 0x1c4   : > { %v1360_v52 = vpop.eup %1359 }
 0x1c5   : > { %v766_v54 = vmul.f32 %v1360_v52, %v731_v46  ;;  %v734_v55 = vpop.xlane.xlu1 %733  ;;  %v758_v56 = vsel %vm757_vm6, %v1358_v44, %v754_v51  ;;  %vm771_vm8 = vweird.f32 %v1360_v52 }
 0x1c6   : > { %1361 = vrcp.f32 %v734_v55  ;;  %v763_v57 = vsel %vm760_vm7, %v762_v53, %v758_v56  ;;  %vm772_vm10 = vmor %vm770_vm9, %vm771_vm8  ;;  %v791_v9 = vand.u32 2147483648, %v734_v55  ;;  %v789_v12 = vand.u32 2147483647, %v734_v55 }
 0x1c7   : > { %v767_v58 = vsub.f32 1.0, %v766_v54  ;;  %v764_v59 = vmul.f32 %v1582_v0, %v763_v57  ;;  %vm785_vm13 = vweird.f32 %v734_v55 }
 0x1c8   : > { %v792_v16 = vor.u32 1.1754944e-38, %v791_v9  ;;  %vm790_vm15 = vcmp.eq.f32.partialorder %v789_v12, 8.507059e+37 }
 0x1c9   : > { %v768_v61 = vmul.f32 %v1360_v52, %v767_v58  ;;  %1280 = vmatmul.msk.f32.vlgmr.msra.gmra.mxu2 %vm677_vm3, %v764_v59 }
 0x1cb   : > { %v769_v63 = vadd.f32 %v1360_v52, %v768_v61 }
 0x1cc   : > { %v1362_v1 = vpop.eup %1361 }
 0x1cd   : > { %v781_v3 = vmul.f32 %v1362_v1, %v734_v55  ;;  %v737_v4 = vpop.xlane.xlu2 %736  ;;  %v773_v6 = vsel %vm772_vm10, %v1360_v52, %v769_v63  ;;  %vm786_vm12 = vweird.f32 %v1362_v1 }
 0x1ce   : > { %1363 = vrcp.f32 %v737_v4  ;;  %v778_v7 = vsel %vm775_vm11, %v777_v2, %v773_v6  ;;  %vm787_vm14 = vmor %vm785_vm13, %vm786_vm12  ;;  %v806_v24 = vand.u32 2147483648, %v737_v4  ;;  %v804_v26 = vand.u32 2147483647, %v737_v4 }
 0x1cf   : > { %v782_v8 = vsub.f32 1.0, %v781_v3  ;;  %v779_v0 = vmul.f32 %v1586_v5, %v778_v7  ;;  %vm800_vm2 = vweird.f32 %v737_v4 }
 0x1d0   : > { %v807_v29 = vor.u32 1.1754944e-38, %v806_v24  ;;  %vm805_vm5 = vcmp.eq.f32.partialorder %v804_v26, 8.507059e+37 }
 0x1d1   : > { %v783_v11 = vmul.f32 %v1362_v1, %v782_v8  ;;  %1281 = vmatmul.msk.f32.gmra.mxu2 %vm677_vm3, %v779_v0 }
 0x1d3   : > { %v784_v13 = vadd.f32 %v1362_v1, %v783_v11 }
 0x1d4   : > { %v1364_v14 = vpop.eup %1363 }
 0x1d5   : > { %v796_v17 = vmul.f32 %v1364_v14, %v737_v4  ;;  %v740_v18 = vpop.xlane.xlu0 %739  ;;  %v788_v19 = vsel %vm787_vm14, %v1362_v1, %v784_v13  ;;  %vm801_vm0 = vweird.f32 %v1364_v14 }
 0x1d6   : > { %1365 = vrcp.f32 %v740_v18  ;;  %v793_v21 = vsel %vm790_vm15, %v792_v16, %v788_v19  ;;  %vm802_vm4 = vmor %vm800_vm2, %vm801_vm0  ;;  %v821_v38 = vand.u32 2147483648, %v740_v18  ;;  %v819_v39 = vand.u32 2147483647, %v740_v18  ;;  %v935_v16 = vld [vmem:[%s1497_s18] sm:$0xff] }
 0x1d7   : > { %v797_v22 = vsub.f32 1.0, %v796_v17  ;;  %v794_v5 = vmul.f32 %v1590_v10, %v793_v21  ;;  %vm815_vm7 = vweird.f32 %v740_v18  ;;  %975 = vmatpush.msra.mxu3 %v935_v16 }
 0x1d8   : > { %v822_v42 = vor.u32 1.1754944e-38, %v821_v38  ;;  %vm820_vm9 = vcmp.eq.f32.partialorder %v819_v39, 8.507059e+37 }
 0x1d9   : > { %v798_v23 = vmul.f32 %v1364_v14, %v797_v22  ;;  %1282 = vmatmul.msk.f32.gmra.mxu2 %vm677_vm3, %v794_v5 }
 0x1db   : > { %v799_v27 = vadd.f32 %v1364_v14, %v798_v23  ;;  %v1001_v23 = vld [vmem:[#allocation2] sm:$0xff] }
 0x1dc   : > { %v1366_v28 = vpop.eup %1365 }
 0x1dd   : > { %v811_v31 = vmul.f32 %v1366_v28, %v740_v18  ;;  %v743_v32 = vpop.xlane.xlu1 %742  ;;  %v803_v34 = vsel %vm802_vm4, %v1364_v14, %v799_v27  ;;  %vm816_vm6 = vweird.f32 %v1366_v28  ;;  %v1002_v27 = vld [vmem:[#allocation2 + $0x8] sm:$0xff] }
 0x1de   : > { %1367 = vrcp.f32 %v743_v32  ;;  %v808_v36 = vsel %vm805_vm5, %v807_v29, %v803_v34  ;;  %vm817_vm8 = vmor %vm815_vm7, %vm816_vm6  ;;  %v836_v49 = vand.u32 2147483648, %v743_v32  ;;  %v834_v50 = vand.u32 2147483647, %v743_v32 }
 0x1df   : > { %v812_v35 = vsub.f32 1.0, %v811_v31  ;;  %v809_v10 = vmul.f32 %v1594_v15, %v808_v36  ;;  %vm830_vm11 = vweird.f32 %v743_v32  ;;  %v1003_v31 = vld [vmem:[#allocation2 + $0x10] sm:$0xff] }
 0x1e0   : > { %v837_v53 = vor.u32 1.1754944e-38, %v836_v49  ;;  %vm835_vm13 = vcmp.eq.f32.partialorder %v834_v50, 8.507059e+37 }
 0x1e1   : > { %v813_v37 = vmul.f32 %v1366_v28, %v812_v35  ;;  %1283 = vmatmul.msk.f32.gmra.mxu2 %vm677_vm3, %v809_v10  ;;  %v1004_v35 = vld [vmem:[#allocation2 + $0x18] sm:$0xff] }
 0x1e3   : > { %v814_v40 = vadd.f32 %v1366_v28, %v813_v37  ;;  %v1005_v37 = vld [vmem:[#allocation2 + $0x20] sm:$0xff] }
 0x1e4   : > { %v1368_v41 = vpop.eup %1367 }
 0x1e5   : > { %v826_v43 = vmul.f32 %v1368_v41, %v743_v32  ;;  %v746_v44 = vpop.xlane.xlu2 %745  ;;  %v818_v45 = vsel %vm817_vm8, %v1366_v28, %v814_v40  ;;  %vm831_vm10 = vweird.f32 %v1368_v41  ;;  %v1006_v40 = vld [vmem:[#allocation2 + $0x28] sm:$0xff] }
 0x1e6   : > { %1369 = vrcp.f32 %v746_v44  ;;  %v823_v47 = vsel %vm820_vm9, %v822_v42, %v818_v45  ;;  %vm832_vm12 = vmor %vm830_vm11, %vm831_vm10  ;;  %v851_v59 = vand.u32 2147483648, %v746_v44  ;;  %v849_v61 = vand.u32 2147483647, %v746_v44 }
 0x1e7   : > { %v827_v46 = vsub.f32 1.0, %v826_v43  ;;  %v824_v15 = vmul.f32 %v1598_v20, %v823_v47  ;;  %vm845_vm15 = vweird.f32 %v746_v44  ;;  %v1007_v43 = vld [vmem:[#allocation2 + $0x30] sm:$0xff] }
 0x1e8   : > { %v852_v1 = vor.u32 1.1754944e-38, %v851_v59  ;;  %vm850_vm2 = vcmp.eq.f32.partialorder %v849_v61, 8.507059e+37 }
 0x1e9   : > { %v828_v48 = vmul.f32 %v1368_v41, %v827_v46  ;;  %1284 = vmatmul.msk.f32.gmra.mxu2 %vm677_vm3, %v824_v15  ;;  %v1008_v46 = vld [vmem:[#allocation2 + $0x38] sm:$0xff] }
 0x1eb   : > { %v829_v51 = vadd.f32 %v1368_v41, %v828_v48 }
 0x1ec   : > { %v1370_v52 = vpop.eup %1369 }
 0x1ed   : > { %v841_v54 = vmul.f32 %v1370_v52, %v746_v44  ;;  %v749_v55 = vpop.xlane.xlu0 %748  ;;  %v833_v56 = vsel %vm832_vm12, %v1368_v41, %v829_v51  ;;  %vm846_vm14 = vweird.f32 %v1370_v52 }
 0x1ee   : > { %1371 = vrcp.f32 %v749_v55  ;;  %v838_v58 = vsel %vm835_vm13, %v837_v53, %v833_v56  ;;  %vm847_vm0 = vmor %vm845_vm15, %vm846_vm14  ;;  %v866_v8 = vand.u32 2147483648, %v749_v55  ;;  %v864_v0 = vand.u32 2147483647, %v749_v55 }
 0x1ef   : > { %v842_v57 = vsub.f32 1.0, %v841_v54  ;;  %v839_v20 = vmul.f32 %v1602_v25, %v838_v58  ;;  %vm860_vm5 = vweird.f32 %v749_v55 }
 0x1f0   : > { %v867_v11 = vor.u32 1.1754944e-38, %v866_v8  ;;  %vm865_vm7 = vcmp.eq.f32.partialorder %v864_v0, 8.507059e+37 }
 0x1f1   : > { %v843_v60 = vmul.f32 %v1370_v52, %v842_v57  ;;  %1285 = vmatmul.msk.f32.gmra.mxu2 %vm677_vm3, %v839_v20 }
 0x1f3   : > { %v844_v62 = vadd.f32 %v1370_v52, %v843_v60 }
 0x1f4   : > { %v1372_v63 = vpop.eup %1371 }
 0x1f5   : > { %v856_v2 = vmul.f32 %v1372_v63, %v749_v55  ;;  %v848_v3 = vsel %vm847_vm0, %v1370_v52, %v844_v62  ;;  %vm861_vm4 = vweird.f32 %v1372_v63 }
 0x1f6   : > { %v853_v4 = vsel %vm850_vm2, %v852_v1, %v848_v3  ;;  %vm862_vm6 = vmor %vm860_vm5, %vm861_vm4 }
 0x1f7   : > { %v857_v6 = vsub.f32 1.0, %v856_v2  ;;  %v854_v7 = vmul.f32 %v1606_v30, %v853_v4 }
 0x1f9   : > { %v858_v25 = vmul.f32 %v1372_v63, %v857_v6  ;;  %1286 = vmatmul.msk.f32.gmra.mxu2 %vm677_vm3, %v854_v7 }
 0x1fb   : > { %v859_v9 = vadd.f32 %v1372_v63, %v858_v25 }
 0x1fd   : > { %v863_v12 = vsel %vm862_vm6, %v1372_v63, %v859_v9 }
 0x1fe   : > { %v868_v13 = vsel %vm865_vm7, %v867_v11, %v863_v12 }
 0x1ff   : > { %v869_v14 = vmul.f32 %v1610_v33, %v868_v13 }
 0x201   : > { %1287 = vmatmul.msk.f32.gmra.mxu2 %vm677_vm3, %v869_v14  ;;  %vm1017_vm3 = vcmask 261120  }
 0x24c   : > { %v911_v30 = vpop.f32.mrf.mxu2 }
 0x24d   : > { %1288 = vmatmul.msk.f32.vlgmr.msra.gmra.mxu3 %vm587_vm1, %v911_v30 }
 0x254   : > { %v914_v17 = vpop.f32.mrf.mxu2 }
 0x255   : > { %1289 = vmatmul.msk.f32.gmra.mxu3 %vm587_vm1, %v914_v17 }
 0x25c   : > { %v917_v18 = vpop.f32.mrf.mxu2 }
 0x25d   : > { %1290 = vmatmul.msk.f32.gmra.mxu3 %vm587_vm1, %v917_v18 }
 0x264   : > { %v920_v19 = vpop.f32.mrf.mxu2 }
 0x265   : > { %1291 = vmatmul.msk.f32.gmra.mxu3 %vm587_vm1, %v920_v19 }
 0x26c   : > { %v923_v21 = vpop.f32.mrf.mxu2 }
 0x26d   : > { %1292 = vmatmul.msk.f32.gmra.mxu3 %vm587_vm1, %v923_v21 }
 0x274   : > { %v926_v33 = vpop.f32.mrf.mxu2 }
 0x275   : > { %1293 = vmatmul.msk.f32.gmra.mxu3 %vm587_vm1, %v926_v33 }
 0x27c   : > { %v929_v22 = vpop.f32.mrf.mxu2 }
 0x27d   : > { %1294 = vmatmul.msk.f32.gmra.mxu3 %vm587_vm1, %v929_v22 }
 0x284   : > { %v932_v5 = vpop.f32.mrf.mxu2 }
 0x285   : > { %1295 = vmatmul.msk.f32.gmra.mxu3 %vm587_vm1, %v932_v5 }
 0x2d0   : > { %v977_v24 = vpop.f32.mrf.mxu3 }
 0x2d1   : > { %v1009_v26 = vadd.f32 %v1001_v23, %v977_v24 }
 0x2d3   : > { %1018 = vst.msk [vmem:[#allocation2] sm:$0xff] %vm1017_vm3, %v1009_v26 }
 0x2d8   : > { %v980_v28 = vpop.f32.mrf.mxu3 }
 0x2d9   : > { %v1010_v29 = vadd.f32 %v1002_v27, %v980_v28 }
 0x2db   : > { %1019 = vst.msk [vmem:[#allocation2 + $0x8] sm:$0xff] %vm1017_vm3, %v1010_v29 }
 0x2e0   : > { %v983_v32 = vpop.f32.mrf.mxu3 }
 0x2e1   : > { %v1011_v34 = vadd.f32 %v1003_v31, %v983_v32 }
 0x2e3   : > { %1020 = vst.msk [vmem:[#allocation2 + $0x10] sm:$0xff] %vm1017_vm3, %v1011_v34 }
 0x2e8   : > { %v986_v36 = vpop.f32.mrf.mxu3 }
 0x2e9   : > { %v1012_v10 = vadd.f32 %v1004_v35, %v986_v36 }
 0x2eb   : > { %1021 = vst.msk [vmem:[#allocation2 + $0x18] sm:$0xff] %vm1017_vm3, %v1012_v10 }
 0x2f0   : > { %v989_v38 = vpop.f32.mrf.mxu3 }
 0x2f1   : > { %v1013_v39 = vadd.f32 %v1005_v37, %v989_v38 }
 0x2f3   : > { %1022 = vst.msk [vmem:[#allocation2 + $0x20] sm:$0xff] %vm1017_vm3, %v1013_v39 }
 0x2f8   : > { %v992_v41 = vpop.f32.mrf.mxu3 }
 0x2f9   : > { %v1014_v42 = vadd.f32 %v1006_v40, %v992_v41 }
 0x2fb   : > { %1023 = vst.msk [vmem:[#allocation2 + $0x28] sm:$0xff] %vm1017_vm3, %v1014_v42 }
 0x300   : > { %v995_v44 = vpop.f32.mrf.mxu3 }
 0x301   : > { %v1015_v45 = vadd.f32 %v1007_v43, %v995_v44 }
 0x303   : > { %1024 = vst.msk [vmem:[#allocation2 + $0x30] sm:$0xff] %vm1017_vm3, %v1015_v45 }
 0x307   : > { %1029 = sbr.rel (%p1296_p8) target bundleno = 792 (0x318), region = 56 }
 0x308   : > { %v998_v47 = vpop.f32.mrf.mxu3 }
 0x309   : > { %v1016_v15 = vadd.f32 %v1008_v46, %v998_v47 }
 0x30b   : > { %1025 = vst.msk [vmem:[#allocation2 + $0x38] sm:$0xff] %vm1017_vm3, %v1016_v15 }
 0x30c   : > { %v1030_v48 = vld [vmem:[#allocation2] sm:$0xff]  ;;  %v1031_v50 = vld [vmem:[#allocation2 + $0x8] sm:$0xff]  ;;  %v1032_v51 = vld [vmem:[#allocation2 + $0x10] sm:$0xff] }
 0x30d   : > { %v1373_v49 = vld [vmem:[%s1696_s6] ss:$0 sm:$0xff]  ;;  %v1033_v52 = vld [vmem:[#allocation2 + $0x18] sm:$0xff]  ;;  %v1035_v57 = vld [vmem:[#allocation2 + $0x28] sm:$0xff] }
 0x30e   : > { %v1042_v53 = vadd.f32 %v1373_v49, %v1030_v48  ;;  %v1043_v54 = vadd.f32 %v1373_v49, %v1031_v50  ;;  %v1044_v55 = vadd.f32 %v1373_v49, %v1032_v51  ;;  %v1034_v56 = vld [vmem:[#allocation2 + $0x20] sm:$0xff]  ;;  %v1045_v58 = vadd.f32 %v1373_v49, %v1033_v52  ;;  %v1036_v59 = vld [vmem:[#allocation2 + $0x30] sm:$0xff] }
 0x30f   : > { %v1046_v20 = vadd.f32 %v1373_v49, %v1034_v56  ;;  %v1047_v61 = vadd.f32 %v1373_v49, %v1035_v57  ;;  %v1048_v62 = vadd.f32 %v1373_v49, %v1036_v59 }
 0x310   : > { %1050 = vst.msk [vmem:[%s1492_s14] sm:$0xff] %vm1017_vm3, %v1042_v53 }
 0x311   : > { %1051 = vst.msk [vmem:[%s1492_s14 + $0x8] sm:$0xff] %vm1017_vm3, %v1043_v54 }
 0x312   : > { %v1037_v60 = vld [vmem:[#allocation2 + $0x38] sm:$0xff]  ;;  %1052 = vst.msk [vmem:[%s1492_s14 + $0x10] sm:$0xff] %vm1017_vm3, %v1044_v55 }
 0x313   : > { %1053 = vst.msk [vmem:[%s1492_s14 + $0x18] sm:$0xff] %vm1017_vm3, %v1045_v58  ;;  %v1049_v63 = vadd.f32 %v1373_v49, %v1037_v60 }
 0x314   : > { %1054 = vst.msk [vmem:[%s1492_s14 + $0x20] sm:$0xff] %vm1017_vm3, %v1046_v20 }
 0x315   : > { %1055 = vst.msk [vmem:[%s1492_s14 + $0x28] sm:$0xff] %vm1017_vm3, %v1047_v61 }
 0x316   : > { %1056 = vst.msk [vmem:[%s1492_s14 + $0x30] sm:$0xff] %vm1017_vm3, %v1048_v62 }
 0x317   : > { %1057 = vst.msk [vmem:[%s1492_s14 + $0x38] sm:$0xff] %vm1017_vm3, %v1049_v63 }
 0x318 PF: > { %s17_s28 = sadd.s32 1, %s1412_s28   ;;  %s1698_s24 = smov %s1404_s26 }
 0x319   : > { %p14_p9 = scmp.ge.s32.totalorder %s17_s28, 10   ;;  %s1699_s25 = smov %s1408_s27 }
 0x31a   : > { %s1700_s26 = smov %s1703_s29  ;;  %s1701_s27 = smov %s1707_s30 }
 0x31b   :  { %16 = sbr.rel (!%p14_p9) target bundleno = 3 (0x3), region = 98 }

</bundles_post_ra>
